<compile_context>
chip_gen: v7x
topology: tpu7x:2x2x1
jax: 0.10.0
libtpu: 0.0.40
codegen_flags: <defaults>
</compile_context>

<pallas_src>
import functools

import jax
import jax.numpy as jnp
from jax.experimental import pallas as pl
from jax.experimental.pallas import tpu as pltpu

HIDDEN = 512


def _round_up(x, m):
    return (x + m - 1) // m * m


# --------------------------------------------------------------------------
# Fused MLP kernel: (x @ W1 + b1).relu() @ W2 + b2, one program per M tile.
# --------------------------------------------------------------------------
def _mlp_kernel(x_ref, w1_ref, b1_ref, w2_ref, b2_ref, o_ref, h_ref):
    # Layer 1: full-K matmul on the MXU, f32 accumulate, bias + ReLU fused.
    xb = x_ref[...].astype(jnp.bfloat16)                       # cast in-kernel
    h = jnp.dot(xb, w1_ref[...], preferred_element_type=jnp.float32)
    h = jnp.maximum(h + b1_ref[...], 0.0)                      # (tm,Hp)+(1,Hp)

    # Hidden activation stays in VMEM scratch (bf16) between the two matmuls.
    h_ref[...] = h.astype(jnp.bfloat16)

    # Layer 2: full-K matmul, bias fused into the single output write.
    y = jnp.dot(h_ref[...], w2_ref[...], preferred_element_type=jnp.float32)
    o_ref[...] = (y + b2_ref[...]).astype(o_ref.dtype)


# --------------------------------------------------------------------------
# Wrapper: grid only over M tiles; weights resident in VMEM.
# --------------------------------------------------------------------------
def mlp_pallas(x2d, params, *, output_dim, tm_max=512):
    """y = relu(x2d @ W1 + b1) @ W2 + b2 with pre-padded bf16 weights."""
    M, K = x2d.shape
    Kp, Hp = params["w1"].shape          # padded input / hidden dims
    Np = params["w2"].shape[1]           # padded output dim

    # bf16 packs two rows per sublane -> round M to a multiple of 16.
    Mp = _round_up(M, 16)
    tm = min(Mp, tm_max)
    Mp = _round_up(Mp, tm)

    # Only the (small) activation is padded per call; weights were padded
    # and cast once at parameter-build time.
    x_p = jnp.pad(x2d.astype(jnp.float32), ((0, Mp - M), (0, Kp - K)))

    grid = (Mp // tm,)

    out = pl.pallas_call(
        _mlp_kernel,
        out_shape=jax.ShapeDtypeStruct((Mp, Np), jnp.float32),
        grid_spec=pltpu.PrefetchScalarGridSpec(
            num_scalar_prefetch=0,
            grid=grid,
            in_specs=[
                pl.BlockSpec((tm, Kp), lambda i: (i, 0)),   # activations (per-tile)
                pl.BlockSpec((Kp, Hp), lambda i: (0, 0)),   # W1 (VMEM-resident)
                pl.BlockSpec((1, Hp), lambda i: (0, 0)),    # b1 (VMEM-resident)
                pl.BlockSpec((Hp, Np), lambda i: (0, 0)),   # W2 (VMEM-resident)
                pl.BlockSpec((1, Np), lambda i: (0, 0)),    # b2 (VMEM-resident)
            ],
            out_specs=pl.BlockSpec((tm, Np), lambda i: (i, 0)),
            scratch_shapes=[pltpu.VMEM((tm, Hp), jnp.bfloat16)],   # hidden act
        ),
        compiler_params=pltpu.CompilerParams(
            dimension_semantics=("parallel",),
        ),
    )(x_p, params["w1"], params["b1"], params["w2"], params["b2"])

    return out[:M, :output_dim]


# --------------------------------------------------------------------------
# PredictorNetwork forward + parameter construction
# --------------------------------------------------------------------------
def make_predictor_params(key, input_dim, output_dim, hidden=HIDDEN):
    """Returns (pallas_params, f32_reference_params).

    pallas_params holds weights pre-padded to (8,128)-friendly shapes and
    pre-cast to bf16 (done ONCE here, not per forward call); biases stay f32.
    """
    k1, k2, k3, k4 = jax.random.split(key, 4)
    # PyTorch default Linear init: U(-1/sqrt(fan_in), 1/sqrt(fan_in))
    lim1 = 1.0 / float(input_dim) ** 0.5
    lim2 = 1.0 / float(hidden) ** 0.5
    w1 = jax.random.uniform(k1, (input_dim, hidden), jnp.float32, -lim1, lim1)
    b1 = jax.random.uniform(k2, (hidden,), jnp.float32, -lim1, lim1)
    w2 = jax.random.uniform(k3, (hidden, output_dim), jnp.float32, -lim2, lim2)
    b2 = jax.random.uniform(k4, (output_dim,), jnp.float32, -lim2, lim2)

    Kp = _round_up(input_dim, 128)
    Hp = _round_up(hidden, 128)
    Np = _round_up(output_dim, 128)

    pallas_params = {
        "w1": jnp.pad(w1, ((0, Kp - input_dim), (0, Hp - hidden))).astype(jnp.bfloat16),
        "b1": jnp.pad(b1, (0, Hp - hidden)).reshape(1, Hp).astype(jnp.float32),
        "w2": jnp.pad(w2, ((0, Hp - hidden), (0, Np - output_dim))).astype(jnp.bfloat16),
        "b2": jnp.pad(b2, (0, Np - output_dim)).reshape(1, Np).astype(jnp.float32),
    }
    ref_params = {"w1": w1, "b1": b1, "w2": w2, "b2": b2}
    return pallas_params, ref_params


def predictor_forward(params, x, *, output_dim):
    """Equivalent of PredictorNetwork.forward: flatten -> fc1 -> ReLU -> fc2."""
    B = x.shape[0]
    x2 = x.reshape(B, -1)                         # x.view(x.size(0), -1)
    return mlp_pallas(x2, params, output_dim=output_dim)


# --------------------------------------------------------------------------
if __name__ == "__main__":
    root = jax.random.PRNGKey(0)

    # Small shapes consistent with the module: batch=2, input (4,16,16) -> 1024
    batch, C, H, W = 2, 4, 16, 16
    input_dim = C * H * W
    output_dim = 32

    pkey, xkey = jax.random.split(root)
    params, ref_params = make_predictor_params(pkey, input_dim, output_dim)
    x = jax.random.normal(xkey, (batch, C, H, W), dtype=jnp.float32)

    fwd = jax.jit(functools.partial(predictor_forward, output_dim=output_dim))
    out = jax.block_until_ready(fwd(params, x))

    assert out.shape == (batch, output_dim), out.shape
    assert out.dtype == jnp.float32
    assert bool(jnp.all(jnp.isfinite(out)))

    # Sanity check against a plain-JAX f32 reference (bf16 matmul tolerance).
    x2 = x.reshape(batch, -1)
    h_ref = jnp.maximum(x2 @ ref_params["w1"] + ref_params["b1"], 0.0)
    y_ref = h_ref @ ref_params["w2"] + ref_params["b2"]
    err = jnp.max(jnp.abs(out - y_ref)) / (jnp.max(jnp.abs(y_ref)) + 1e-6)
    assert float(err) < 2e-2, float(err)

    print("KERNEL_OK")
</pallas_src>

<mosaic_0001>
module attributes {stable_mosaic.version = 11 : i64} {
  func.func @_mlp_kernel(%arg0: i32, %arg1: memref<16x1024xf32, #tpu.memory_space<vmem>>, %arg2: memref<1024x512xbf16, #tpu.memory_space<vmem>>, %arg3: memref<1x512xf32, #tpu.memory_space<vmem>>, %arg4: memref<512x128xbf16, #tpu.memory_space<vmem>>, %arg5: memref<1x128xf32, #tpu.memory_space<vmem>>, %arg6: memref<16x128xf32, #tpu.memory_space<vmem>>, %arg7: memref<16x512xbf16, #tpu.memory_space<vmem>>) attributes {dimension_semantics = [#tpu.dimension_semantics<parallel>], iteration_bounds = array<i64: 1>, scalar_prefetch = 0 : i64, scratch_operands = 1 : i64, tpu.core_type = #tpu.core_type<tc>, window_params = [{transform_indices = @transform_0, window_bounds = array<i64: 16, 1024>}, {pipeline_mode = #tpu.pipeline_mode<synchronous>, transform_indices = @transform_1, window_bounds = array<i64: 1024, 512>}, {pipeline_mode = #tpu.pipeline_mode<synchronous>, transform_indices = @transform_2, window_bounds = array<i64: 1, 512>}, {pipeline_mode = #tpu.pipeline_mode<synchronous>, transform_indices = @transform_3, window_bounds = array<i64: 512, 128>}, {pipeline_mode = #tpu.pipeline_mode<synchronous>, transform_indices = @transform_4, window_bounds = array<i64: 1, 128>}, {transform_indices = @transform_5, window_bounds = array<i64: 16, 128>}]} {
    %c0 = arith.constant 0 : index
    %c0_0 = arith.constant 0 : index
    %0 = vector.load %arg1[%c0, %c0_0] : memref<16x1024xf32, #tpu.memory_space<vmem>>, vector<16x1024xf32>
    %1 = arith.truncf %0 : vector<16x1024xf32> to vector<16x1024xbf16>
    %c0_1 = arith.constant 0 : index
    %c0_2 = arith.constant 0 : index
    %2 = vector.load %arg2[%c0_1, %c0_2] : memref<1024x512xbf16, #tpu.memory_space<vmem>>, vector<1024x512xbf16>
    %cst = arith.constant dense<0.000000e+00> : vector<16x512xf32>
    %3 = tpu.matmul %1, %2, %cst {dimension_numbers = #tpu.dot_dimension_numbers<[1], [0], [0], [1], [0, 0, 1, 1], [], []>} : vector<16x1024xbf16>, vector<1024x512xbf16>, vector<16x512xf32> -> vector<16x512xf32>
    %c0_3 = arith.constant 0 : index
    %c0_4 = arith.constant 0 : index
    %4 = vector.load %arg3[%c0_3, %c0_4] : memref<1x512xf32, #tpu.memory_space<vmem>>, vector<1x512xf32>
    %5 = vector.broadcast %4 : vector<1x512xf32> to vector<16x512xf32>
    %6 = arith.addf %3, %5 : vector<16x512xf32>
    %cst_5 = arith.constant 0.000000e+00 : f32
    %7 = vector.broadcast %cst_5 : f32 to vector<16x512xf32>
    %8 = arith.maximumf %6, %7 : vector<16x512xf32>
    %9 = arith.truncf %8 : vector<16x512xf32> to vector<16x512xbf16>
    %c0_6 = arith.constant 0 : index
    %c0_7 = arith.constant 0 : index
    %10 = vector.load %arg7[%c0_6, %c0_7] : memref<16x512xbf16, #tpu.memory_space<vmem>>, vector<16x512xbf16>
    tpu.vector_store %arg7[%c0_6, %c0_7], %9 {strides = array<i32>} : memref<16x512xbf16, #tpu.memory_space<vmem>>, vector<16x512xbf16>,
    %c0_8 = arith.constant 0 : index
    %c0_9 = arith.constant 0 : index
    %11 = vector.load %arg7[%c0_8, %c0_9] : memref<16x512xbf16, #tpu.memory_space<vmem>>, vector<16x512xbf16>
    %c0_10 = arith.constant 0 : index
    %c0_11 = arith.constant 0 : index
    %12 = vector.load %arg4[%c0_10, %c0_11] : memref<512x128xbf16, #tpu.memory_space<vmem>>, vector<512x128xbf16>
    %cst_12 = arith.constant dense<0.000000e+00> : vector<16x128xf32>
    %13 = tpu.matmul %11, %12, %cst_12 {dimension_numbers = #tpu.dot_dimension_numbers<[1], [0], [0], [1], [0, 0, 1, 1], [], []>} : vector<16x512xbf16>, vector<512x128xbf16>, vector<16x128xf32> -> vector<16x128xf32>
    %c0_13 = arith.constant 0 : index
    %c0_14 = arith.constant 0 : index
    %14 = vector.load %arg5[%c0_13, %c0_14] : memref<1x128xf32, #tpu.memory_space<vmem>>, vector<1x128xf32>
    %15 = vector.broadcast %14 : vector<1x128xf32> to vector<16x128xf32>
    %16 = arith.addf %13, %15 : vector<16x128xf32>
    %c0_15 = arith.constant 0 : index
    %c0_16 = arith.constant 0 : index
    %17 = vector.load %arg6[%c0_15, %c0_16] : memref<16x128xf32, #tpu.memory_space<vmem>>, vector<16x128xf32>
    tpu.vector_store %arg6[%c0_15, %c0_16], %16 {strides = array<i32>} : memref<16x128xf32, #tpu.memory_space<vmem>>, vector<16x128xf32>,
    return
  }
  func.func @transform_0(%arg0: i32) -> (i32, i32) {
    %c0_i32 = arith.constant 0 : i32
    %c0_i32_0 = arith.constant 0 : i32
    return %arg0, %c0_i32 : i32, i32
  }
  func.func @transform_1(%arg0: i32) -> (i32, i32) {
    %c0_i32 = arith.constant 0 : i32
    %c0_i32_0 = arith.constant 0 : i32
    %c0_i32_1 = arith.constant 0 : i32
    return %c0_i32, %c0_i32_0 : i32, i32
  }
  func.func @transform_2(%arg0: i32) -> (i32, i32) {
    %c0_i32 = arith.constant 0 : i32
    %c0_i32_0 = arith.constant 0 : i32
    %c0_i32_1 = arith.constant 0 : i32
    return %c0_i32, %c0_i32_0 : i32, i32
  }
  func.func @transform_3(%arg0: i32) -> (i32, i32) {
    %c0_i32 = arith.constant 0 : i32
    %c0_i32_0 = arith.constant 0 : i32
    %c0_i32_1 = arith.constant 0 : i32
    return %c0_i32, %c0_i32_0 : i32, i32
  }
  func.func @transform_4(%arg0: i32) -> (i32, i32) {
    %c0_i32 = arith.constant 0 : i32
    %c0_i32_0 = arith.constant 0 : i32
    %c0_i32_1 = arith.constant 0 : i32
    return %c0_i32, %c0_i32_0 : i32, i32
  }
  func.func @transform_5(%arg0: i32) -> (i32, i32) {
    %c0_i32 = arith.constant 0 : i32
    %c0_i32_0 = arith.constant 0 : i32
    return %arg0, %c0_i32 : i32, i32
  }
}

</mosaic_0001>

<bundles_post_ra>
// kernel: predictor_forward.1
= control target key start
LH: loop header
LB: loop body
LE: loop exit
PB: predicated region body
PF: predicated region fallthrough
CT: control target
= control target key end

     0   :  { %10 = vsyncpa [#allocation4], 0  ;;  %s3141_s18 = smov [#allocation3]   ;;  %s3342_s0 = inlined_call_operand.vmem [shape: f32[16,1024], index: 0, kind: input, shape index: {}]   ;;  %s3343_s1 = inlined_call_operand.hbm [shape: bf16[1024,512], index: 1, kind: input, shape index: {}]   ;;  %s3344_s2 = inlined_call_operand.vmem [shape: f32[1,512], index: 2, kind: input, shape index: {}]   ;;  %s3345_s3 = inlined_call_operand.vmem [shape: bf16[512,128], index: 3, kind: input, shape index: {}]   ;;  %s3346_s4 = inlined_call_operand.vmem [shape: f32[1,128], index: 4, kind: input, shape index: {}]   ;;  %s3347_s5 = inlined_call_operand.vmem [shape: f32[16,128], index: 5, kind: output, shape index: {}]  }
   0x1   :  { %s18_s19 = sshll.u32 %s3141_s18, 4  ;;  %s3117_s22 = scalar_lea.hbm %s3343_s1, 32768  ;;  %s19_s19 = int_to_ptr.vmem [resolvable:$true] %s18_s19 }
   0x2   :  { %p3118_p0 = scmp.ne.s32.totalorder %s3343_s1, %s3117_s22  ;;  %p3121_p1 = scmp.lt.u32.totalorder %s3117_s22, %s3343_s1 }
   0x4   :  { %p3123_p2 = pnand %p3121_p1, %p3118_p0 }
   0x6   :  { %3126 = shalt.err (!%p3123_p2)
}
   0x7   :  { %s3127_s27 = scalar_lea.vmem %s19_s19, 32768  ;;  %p3132_p4 = scmp.lt.s32.totalorder %s19_s19, %s19_s19 }
   0x8   :  { %p3128_p3 = scmp.ne.s32.totalorder %s19_s19, %s3127_s27  ;;  %p3133_p5 = scmp.lt.s32.totalorder %s3127_s27, %s3127_s27 }
   0xa   :  { %p3134_p6 = por %p3133_p5, %p3132_p4 }
   0xc   :  { %p3135_p7 = pnand %p3134_p6, %p3128_p3 }
   0xe   :  { %3138 = shalt.err (!%p3135_p7)
}
   0xf   :  { %s3142_s28 = smov 256   ;;  %s3143_s29 = smov 16  }
  0x10   :  { %24 = dma.hbm_to_vmem [thread:$0]  %s3343_s1, 32768, %s19_s19, [#allocation4], %s3142_s28, %s3142_s28, %s3143_s29  }
  0x11   :  { %3139 = dma.done.wait [#allocation4], 32768  }
  0x12   :  { %3140 = vsyncadd [#allocation4], 4294934528  ;;  %v2701_v0 = vld [vmem:[#allocation3 + $0x4] ss:$16 sps:$4 sm:$0xff]   ;;  %v2703_v1 = vld [vmem:[#allocation3 + $0xc] ss:$16 sps:$4 sm:$0xff]  }
  0x13   :  { %1617 = vmatprep.subr.bf16.mxu0 %v2701_v0  ;;  %v2705_v2 = vld [vmem:[#allocation3] ss:$16 sps:$4 sm:$0xff]   ;;  %v2706_v3 = vld [vmem:[#allocation3 + $0x8] ss:$16 sps:$4 sm:$0xff]   ;;  %1789 = vmatprep.subr.bf16.mxu1 %v2703_v1  ;;  %v2707_v4 = vld [vmem:[#allocation3 + $0x24] ss:$16 sps:$4 sm:$0xff]  }
  0x14   :  { %1618 = vmatpush1.bf16.msra.mxu0 %v2705_v2  ;;  %1790 = vmatpush1.bf16.msra.mxu1 %v2706_v3  ;;  %v2709_v5 = vld [vmem:[#allocation3 + $0x2c] ss:$16 sps:$4 sm:$0xff]   ;;  %v2711_v6 = vld [vmem:[#allocation3 + $0x20] ss:$16 sps:$4 sm:$0xff]   ;;  %v2712_v7 = vld [vmem:[#allocation3 + $0x28] ss:$16 sps:$4 sm:$0xff]  }
  0x15   :  { %1619 = vmatprep.subr.bf16.mxu0 %v2707_v4  ;;  %1791 = vmatprep.subr.bf16.mxu1 %v2709_v5  ;;  %v2713_v8 = vld [vmem:[#allocation3 + $0x44] ss:$16 sps:$4 sm:$0xff]   ;;  %v2715_v9 = vld [vmem:[#allocation3 + $0x4c] ss:$16 sps:$4 sm:$0xff]   ;;  %v2717_v10 = vld [vmem:[#allocation3 + $0x40] ss:$16 sps:$4 sm:$0xff]  }
  0x16   :  { %v2718_v11 = vld [vmem:[#allocation3 + $0x48] ss:$16 sps:$4 sm:$0xff]   ;;  %v2719_v12 = vld [vmem:[#allocation3 + $0x64] ss:$16 sps:$4 sm:$0xff]   ;;  %v2721_v13 = vld [vmem:[#allocation3 + $0x6c] ss:$16 sps:$4 sm:$0xff]  }
  0x17   :  { %v2723_v14 = vld [vmem:[#allocation3 + $0x60] ss:$16 sps:$4 sm:$0xff]   ;;  %v2724_v15 = vld [vmem:[#allocation3 + $0x68] ss:$16 sps:$4 sm:$0xff]   ;;  %v2725_v16 = vld [vmem:[#allocation3 + $0x84] ss:$16 sps:$4 sm:$0xff]  }
  0x18   :  { %1620 = vmatpush1.bf16.msra.mxu0 %v2711_v6  ;;  %1792 = vmatpush1.bf16.msra.mxu1 %v2712_v7  ;;  %v2727_v17 = vld [vmem:[#allocation3 + $0x8c] ss:$16 sps:$4 sm:$0xff]   ;;  %v2729_v18 = vld [vmem:[#allocation3 + $0x80] ss:$16 sps:$4 sm:$0xff]   ;;  %v2730_v19 = vld [vmem:[#allocation3 + $0x88] ss:$16 sps:$4 sm:$0xff]  }
  0x19   :  { %1621 = vmatprep.subr.bf16.mxu0 %v2713_v8  ;;  %1793 = vmatprep.subr.bf16.mxu1 %v2715_v9  ;;  %v2731_v20 = vld [vmem:[#allocation3 + $0xa4] ss:$16 sps:$4 sm:$0xff]   ;;  %v2733_v21 = vld [vmem:[#allocation3 + $0xac] ss:$16 sps:$4 sm:$0xff]   ;;  %v2735_v22 = vld [vmem:[#allocation3 + $0xa0] ss:$16 sps:$4 sm:$0xff]  }
  0x1a   :  { %v2736_v23 = vld [vmem:[#allocation3 + $0xa8] ss:$16 sps:$4 sm:$0xff]   ;;  %v2737_v24 = vld [vmem:[#allocation3 + $0xc4] ss:$16 sps:$4 sm:$0xff]   ;;  %v2739_v25 = vld [vmem:[#allocation3 + $0xcc] ss:$16 sps:$4 sm:$0xff]  }
  0x1b   :  { %v2741_v26 = vld [vmem:[#allocation3 + $0xc0] ss:$16 sps:$4 sm:$0xff]   ;;  %v2742_v27 = vld [vmem:[#allocation3 + $0xc8] ss:$16 sps:$4 sm:$0xff]   ;;  %v2743_v28 = vld [vmem:[#allocation3 + $0xe4] ss:$16 sps:$4 sm:$0xff]  }
  0x1c   :  { %1622 = vmatpush1.bf16.msra.mxu0 %v2717_v10  ;;  %1794 = vmatpush1.bf16.msra.mxu1 %v2718_v11  ;;  %v2745_v29 = vld [vmem:[#allocation3 + $0xec] ss:$16 sps:$4 sm:$0xff]   ;;  %v2747_v30 = vld [vmem:[#allocation3 + $0xe0] ss:$16 sps:$4 sm:$0xff]   ;;  %v2748_v31 = vld [vmem:[#allocation3 + $0xe8] ss:$16 sps:$4 sm:$0xff]  }
  0x1d   :  { %1623 = vmatprep.subr.bf16.mxu0 %v2719_v12  ;;  %1795 = vmatprep.subr.bf16.mxu1 %v2721_v13  ;;  %v2749_v32 = vld [vmem:[#allocation3 + $0x104] ss:$16 sps:$4 sm:$0xff]   ;;  %v2751_v33 = vld [vmem:[#allocation3 + $0x10c] ss:$16 sps:$4 sm:$0xff]   ;;  %v2753_v34 = vld [vmem:[#allocation3 + $0x100] ss:$16 sps:$4 sm:$0xff]  }
  0x1e   :  { %v2754_v35 = vld [vmem:[#allocation3 + $0x108] ss:$16 sps:$4 sm:$0xff]   ;;  %v2755_v36 = vld [vmem:[#allocation3 + $0x124] ss:$16 sps:$4 sm:$0xff]   ;;  %v2757_v37 = vld [vmem:[#allocation3 + $0x12c] ss:$16 sps:$4 sm:$0xff]  }
  0x1f   :  { %v2759_v38 = vld [vmem:[#allocation3 + $0x120] ss:$16 sps:$4 sm:$0xff]   ;;  %v2760_v39 = vld [vmem:[#allocation3 + $0x128] ss:$16 sps:$4 sm:$0xff]   ;;  %v2761_v40 = vld [vmem:[#allocation3 + $0x144] ss:$16 sps:$4 sm:$0xff]  }
  0x20   :  { %1624 = vmatpush1.bf16.msra.mxu0 %v2723_v14  ;;  %1796 = vmatpush1.bf16.msra.mxu1 %v2724_v15  ;;  %v2763_v41 = vld [vmem:[#allocation3 + $0x14c] ss:$16 sps:$4 sm:$0xff]   ;;  %v2765_v42 = vld [vmem:[#allocation3 + $0x140] ss:$16 sps:$4 sm:$0xff]   ;;  %v2766_v43 = vld [vmem:[#allocation3 + $0x148] ss:$16 sps:$4 sm:$0xff]  }
  0x21   :  { %1625 = vmatprep.subr.bf16.mxu0 %v2725_v16  ;;  %1797 = vmatprep.subr.bf16.mxu1 %v2727_v17  ;;  %v2767_v44 = vld [vmem:[#allocation3 + $0x164] ss:$16 sps:$4 sm:$0xff]   ;;  %v2769_v45 = vld [vmem:[#allocation3 + $0x16c] ss:$16 sps:$4 sm:$0xff]   ;;  %v2771_v48 = vld [vmem:[#allocation3 + $0x160] ss:$16 sps:$4 sm:$0xff]  }
  0x22   :  { %v36_v46 = vld [vmem:[%s3342_s0 + $0x8] sm:$0xff]  ;;  %v2773_v51 = vld [vmem:[#allocation3 + $0x184] ss:$16 sps:$4 sm:$0xff]   ;;  %v2777_v53 = vld [vmem:[#allocation3 + $0x180] ss:$16 sps:$4 sm:$0xff]  }
  0x23   :  { %v44_v47 = vld [vmem:[%s3342_s0 + $0x48] sm:$0xff]  ;;  %v2779_v55 = vld [vmem:[#allocation3 + $0x1a4] ss:$16 sps:$4 sm:$0xff]   ;;  %v2783_v57 = vld [vmem:[#allocation3 + $0x1a0] ss:$16 sps:$4 sm:$0xff]  }
  0x24   :  { %1626 = vmatpush1.bf16.msra.mxu0 %v2729_v18  ;;  %1798 = vmatpush1.bf16.msra.mxu1 %v2730_v19  ;;  %v2772_v49 = vld [vmem:[#allocation3 + $0x168] ss:$16 sps:$4 sm:$0xff]   ;;  %v52_v50 = vpack.c.bf16 %v44_v47, %v36_v46  ;;  %v2775_v52 = vld [vmem:[#allocation3 + $0x18c] ss:$16 sps:$4 sm:$0xff]   ;;  %v2785_v59 = vld [vmem:[#allocation3 + $0x1c4] ss:$16 sps:$4 sm:$0xff]  }
  0x25   :  { %1627 = vmatprep.subr.bf16.mxu0 %v2731_v20  ;;  %1799 = vmatprep.subr.bf16.mxu1 %v2733_v21  ;;  %v2778_v54 = vld [vmem:[#allocation3 + $0x188] ss:$16 sps:$4 sm:$0xff]   ;;  %v2781_v56 = vld [vmem:[#allocation3 + $0x1ac] ss:$16 sps:$4 sm:$0xff]   ;;  %v2789_v61 = vld [vmem:[#allocation3 + $0x1c0] ss:$16 sps:$4 sm:$0xff]  }
  0x26   :  { %1649 = vmatprep.mubr.bf16.mxu0 %v52_v50  ;;  %1821 = vmatprep.mubr.bf16.mxu1 %v52_v50  ;;  %v2784_v58 = vld [vmem:[#allocation3 + $0x1a8] ss:$16 sps:$4 sm:$0xff]   ;;  %v2787_v60 = vld [vmem:[#allocation3 + $0x1cc] ss:$16 sps:$4 sm:$0xff]   ;;  %v2791_v63 = vld [vmem:[#allocation3 + $0x1e4] ss:$16 sps:$4 sm:$0xff]  }
  0x27   :  { %v2790_v62 = vld [vmem:[#allocation3 + $0x1c8] ss:$16 sps:$4 sm:$0xff]   ;;  %v2793_v0 = vld [vmem:[#allocation3 + $0x1ec] ss:$16 sps:$4 sm:$0xff]   ;;  %v2795_v1 = vld [vmem:[#allocation3 + $0x1e0] ss:$16 sps:$4 sm:$0xff]  }
  0x28   :  { %1628 = vmatpush1.bf16.msra.mxu0 %v2735_v22  ;;  %1800 = vmatpush1.bf16.msra.mxu1 %v2736_v23  ;;  %v2796_v2 = vld [vmem:[#allocation3 + $0x1e8] ss:$16 sps:$4 sm:$0xff]   ;;  %v2799_v3 = vld [vmem:[#allocation3 + $0x204] ss:$16 sps:$4 sm:$0xff]   ;;  %v2802_v6 = vld [vmem:[#allocation3 + $0x20c] ss:$16 sps:$4 sm:$0xff]  }
  0x29   :  { %1629 = vmatprep.subr.bf16.mxu0 %v2737_v24  ;;  %1801 = vmatprep.subr.bf16.mxu1 %v2739_v25  ;;  %v35_v4 = vld [vmem:[%s3342_s0] sm:$0xff]  ;;  %v2800_v8 = vld [vmem:[#allocation3 + $0x208] ss:$16 sps:$4 sm:$0xff]   ;;  %v2808_v11 = vld [vmem:[#allocation3 + $0x22c] ss:$16 sps:$4 sm:$0xff]  }
  0x2a   :  { %v43_v5 = vld [vmem:[%s3342_s0 + $0x40] sm:$0xff]  ;;  %v2806_v13 = vld [vmem:[#allocation3 + $0x228] ss:$16 sps:$4 sm:$0xff]   ;;  %v2814_v15 = vld [vmem:[#allocation3 + $0x24c] ss:$16 sps:$4 sm:$0xff]  }
  0x2b   :  { %v2797_v7 = vld [vmem:[#allocation3 + $0x200] ss:$16 sps:$4 sm:$0xff]   ;;  %v51_v9 = vpack.c.bf16 %v43_v5, %v35_v4  ;;  %v2805_v10 = vld [vmem:[#allocation3 + $0x224] ss:$16 sps:$4 sm:$0xff]   ;;  %v2812_v17 = vld [vmem:[#allocation3 + $0x248] ss:$16 sps:$4 sm:$0xff]  }
  0x2c   :  { %1630 = vmatpush1.bf16.msra.mxu0 %v2741_v26  ;;  %1802 = vmatpush1.bf16.msra.mxu1 %v2742_v27  ;;  %v2803_v12 = vld [vmem:[#allocation3 + $0x220] ss:$16 sps:$4 sm:$0xff]   ;;  %v2811_v14 = vld [vmem:[#allocation3 + $0x244] ss:$16 sps:$4 sm:$0xff]   ;;  %v2820_v19 = vld [vmem:[#allocation3 + $0x26c] ss:$16 sps:$4 sm:$0xff]  }
  0x2d   :  { %1631 = vmatprep.subr.bf16.mxu0 %v2743_v28  ;;  %1803 = vmatprep.subr.bf16.mxu1 %v2745_v29  ;;  %v2809_v16 = vld [vmem:[#allocation3 + $0x240] ss:$16 sps:$4 sm:$0xff]   ;;  %v2817_v18 = vld [vmem:[#allocation3 + $0x264] ss:$16 sps:$4 sm:$0xff]   ;;  %v2818_v21 = vld [vmem:[#allocation3 + $0x268] ss:$16 sps:$4 sm:$0xff]  }
  0x2e   :  { %v2815_v20 = vld [vmem:[#allocation3 + $0x260] ss:$16 sps:$4 sm:$0xff]   ;;  %v2823_v22 = vld [vmem:[#allocation3 + $0x284] ss:$16 sps:$4 sm:$0xff]   ;;  %v2826_v23 = vld [vmem:[#allocation3 + $0x28c] ss:$16 sps:$4 sm:$0xff]  }
  0x2f   :  { %v2821_v24 = vld [vmem:[#allocation3 + $0x280] ss:$16 sps:$4 sm:$0xff]   ;;  %v2824_v25 = vld [vmem:[#allocation3 + $0x288] ss:$16 sps:$4 sm:$0xff]   ;;  %v2829_v26 = vld [vmem:[#allocation3 + $0x2a4] ss:$16 sps:$4 sm:$0xff]  }
  0x30   :  { %1632 = vmatpush1.bf16.msra.mxu0 %v2747_v30  ;;  %1804 = vmatpush1.bf16.msra.mxu1 %v2748_v31  ;;  %v2832_v27 = vld [vmem:[#allocation3 + $0x2ac] ss:$16 sps:$4 sm:$0xff]   ;;  %v2827_v28 = vld [vmem:[#allocation3 + $0x2a0] ss:$16 sps:$4 sm:$0xff]   ;;  %v2830_v29 = vld [vmem:[#allocation3 + $0x2a8] ss:$16 sps:$4 sm:$0xff]  }
  0x31   :  { %1633 = vmatprep.subr.bf16.mxu0 %v2749_v32  ;;  %1805 = vmatprep.subr.bf16.mxu1 %v2751_v33  ;;  %v2835_v30 = vld [vmem:[#allocation3 + $0x2c4] ss:$16 sps:$4 sm:$0xff]   ;;  %v2838_v31 = vld [vmem:[#allocation3 + $0x2cc] ss:$16 sps:$4 sm:$0xff]   ;;  %v2851_v47 = vld [vmem:[#allocation3 + $0x320] ss:$16 sps:$4 sm:$0xff]  }
  0x32   :  { %v38_v32 = vld [vmem:[%s3342_s0 + $0x18] sm:$0xff]  ;;  %v2889_v5 = vld [vmem:[#allocation3 + $0x3e4] ss:$16 sps:$4 sm:$0xff]  }
  0x33   :  { %v46_v33 = vld [vmem:[%s3342_s0 + $0x58] sm:$0xff] }
  0x34   :  { %1634 = vmatpush1.bf16.msra.mxu0 %v2753_v34  ;;  %1806 = vmatpush1.bf16.msra.mxu1 %v2754_v35  ;;  %v2833_v34 = vld [vmem:[#allocation3 + $0x2c0] ss:$16 sps:$4 sm:$0xff]   ;;  %v2836_v35 = vld [vmem:[#allocation3 + $0x2c8] ss:$16 sps:$4 sm:$0xff]   ;;  %v2856_v46 = vld [vmem:[#allocation3 + $0x32c] ss:$16 sps:$4 sm:$0xff]  }
  0x35   :  { %1635 = vmatprep.subr.bf16.mxu0 %v2755_v36  ;;  %1807 = vmatprep.subr.bf16.mxu1 %v2757_v37  ;;  %v54_v36 = vpack.c.bf16 %v46_v33, %v38_v32  ;;  %v2841_v37 = vld [vmem:[#allocation3 + $0x2e4] ss:$16 sps:$4 sm:$0xff]   ;;  %v2862_v50 = vld [vmem:[#allocation3 + $0x34c] ss:$16 sps:$4 sm:$0xff]   ;;  %v2884_v4 = vld [vmem:[#allocation3 + $0x3c8] ss:$16 sps:$4 sm:$0xff]  }
  0x36   :  { %v2922_v32 = vld [vmem:[#allocation3 + $0x48c] ss:$16 sps:$4 sm:$0xff]   ;;  %v2917_v33 = vld [vmem:[#allocation3 + $0x480] ss:$16 sps:$4 sm:$0xff]  }
  0x38   :  { %1636 = vmatpush1.bf16.msra.mxu0 %v2759_v38  ;;  %1808 = vmatpush1.bf16.msra.mxu1 %v2760_v39  ;;  %v2844_v38 = vld [vmem:[#allocation3 + $0x2ec] ss:$16 sps:$4 sm:$0xff]   ;;  %v2839_v39 = vld [vmem:[#allocation3 + $0x2e0] ss:$16 sps:$4 sm:$0xff]  }
  0x39   :  { %1637 = vmatprep.subr.bf16.mxu0 %v2761_v40  ;;  %1809 = vmatprep.subr.bf16.mxu1 %v2763_v41  ;;  %v2842_v40 = vld [vmem:[#allocation3 + $0x2e8] ss:$16 sps:$4 sm:$0xff]   ;;  %v2847_v41 = vld [vmem:[#allocation3 + $0x304] ss:$16 sps:$4 sm:$0xff]  }
  0x3c   :  { %1638 = vmatpush1.bf16.msra.mxu0 %v2765_v42  ;;  %1810 = vmatpush1.bf16.msra.mxu1 %v2766_v43  ;;  %v2850_v42 = vld [vmem:[#allocation3 + $0x30c] ss:$16 sps:$4 sm:$0xff]   ;;  %v2845_v43 = vld [vmem:[#allocation3 + $0x300] ss:$16 sps:$4 sm:$0xff]  }
  0x3d   :  { %1639 = vmatprep.subr.bf16.mxu0 %v2767_v44  ;;  %1811 = vmatprep.subr.bf16.mxu1 %v2769_v45  ;;  %v2848_v44 = vld [vmem:[#allocation3 + $0x308] ss:$16 sps:$4 sm:$0xff]   ;;  %v2853_v45 = vld [vmem:[#allocation3 + $0x324] ss:$16 sps:$4 sm:$0xff]  }
  0x40   :  { %1640 = vmatpush1.bf16.msra.mxu0 %v2771_v48  ;;  %1812 = vmatpush1.bf16.msra.mxu1 %v2772_v49  ;;  %v2854_v48 = vld [vmem:[#allocation3 + $0x328] ss:$16 sps:$4 sm:$0xff]   ;;  %v2859_v49 = vld [vmem:[#allocation3 + $0x344] ss:$16 sps:$4 sm:$0xff]  }
  0x41   :  { %1641 = vmatprep.subr.bf16.mxu0 %v2773_v51  ;;  %1813 = vmatprep.subr.bf16.mxu1 %v2775_v52  ;;  %v2857_v51 = vld [vmem:[#allocation3 + $0x340] ss:$16 sps:$4 sm:$0xff]   ;;  %v2860_v52 = vld [vmem:[#allocation3 + $0x348] ss:$16 sps:$4 sm:$0xff]  }
  0x44   :  { %1642 = vmatpush1.bf16.msra.mxu0 %v2777_v53  ;;  %1814 = vmatpush1.bf16.msra.mxu1 %v2778_v54  ;;  %v2865_v53 = vld [vmem:[#allocation3 + $0x364] ss:$16 sps:$4 sm:$0xff]   ;;  %v2868_v54 = vld [vmem:[#allocation3 + $0x36c] ss:$16 sps:$4 sm:$0xff]  }
  0x45   :  { %1643 = vmatprep.subr.bf16.mxu0 %v2779_v55  ;;  %1815 = vmatprep.subr.bf16.mxu1 %v2781_v56  ;;  %v2863_v55 = vld [vmem:[#allocation3 + $0x360] ss:$16 sps:$4 sm:$0xff]   ;;  %v2866_v56 = vld [vmem:[#allocation3 + $0x368] ss:$16 sps:$4 sm:$0xff]  }
  0x48   :  { %1644 = vmatpush1.bf16.msra.mxu0 %v2783_v57  ;;  %1816 = vmatpush1.bf16.msra.mxu1 %v2784_v58  ;;  %v2871_v57 = vld [vmem:[#allocation3 + $0x384] ss:$16 sps:$4 sm:$0xff]   ;;  %v2874_v58 = vld [vmem:[#allocation3 + $0x38c] ss:$16 sps:$4 sm:$0xff]  }
  0x49   :  { %1645 = vmatprep.subr.bf16.mxu0 %v2785_v59  ;;  %1817 = vmatprep.subr.bf16.mxu1 %v2787_v60  ;;  %v2869_v59 = vld [vmem:[#allocation3 + $0x380] ss:$16 sps:$4 sm:$0xff]   ;;  %v2872_v60 = vld [vmem:[#allocation3 + $0x388] ss:$16 sps:$4 sm:$0xff]  }
  0x4c   :  { %1646 = vmatpush1.bf16.msra.mxu0 %v2789_v61  ;;  %1818 = vmatpush1.bf16.msra.mxu1 %v2790_v62  ;;  %v2877_v61 = vld [vmem:[#allocation3 + $0x3a4] ss:$16 sps:$4 sm:$0xff]   ;;  %v2880_v62 = vld [vmem:[#allocation3 + $0x3ac] ss:$16 sps:$4 sm:$0xff]  }
  0x4d   :  { %1647 = vmatprep.subr.bf16.mxu0 %v2791_v63  ;;  %1819 = vmatprep.subr.bf16.mxu1 %v2793_v0  ;;  %v2875_v63 = vld [vmem:[#allocation3 + $0x3a0] ss:$16 sps:$4 sm:$0xff]   ;;  %v2878_v0 = vld [vmem:[#allocation3 + $0x3a8] ss:$16 sps:$4 sm:$0xff]  }
  0x50   :  { %1648 = vmatpush1.bf16.msra.mxu0 %v2795_v1  ;;  %1820 = vmatpush1.bf16.msra.mxu1 %v2796_v2  ;;  %v2883_v1 = vld [vmem:[#allocation3 + $0x3c4] ss:$16 sps:$4 sm:$0xff]   ;;  %v2886_v2 = vld [vmem:[#allocation3 + $0x3cc] ss:$16 sps:$4 sm:$0xff]  }
  0x51   :  { %1660 = vmatprep.subr.bf16.mxu0 %v2799_v3  ;;  %1832 = vmatprep.subr.bf16.mxu1 %v2802_v6  ;;  %v2881_v3 = vld [vmem:[#allocation3 + $0x3c0] ss:$16 sps:$4 sm:$0xff]   ;;  %v2892_v6 = vld [vmem:[#allocation3 + $0x3ec] ss:$16 sps:$4 sm:$0xff]  }
  0x53   :  { %1650 = vmatmul.mubr.bf16.vlgmr.msra.gmra.mrb[0].mxu0 %v51_v9  ;;  %1822 = vmatmul.mubr.bf16.vlgmr.msra.gmra.mrb[0].mxu1 %v51_v9  ;;  %v2895_v9 = vld [vmem:[#allocation3 + $0x404] ss:$16 sps:$4 sm:$0xff]  }
  0x54   :  { %1661 = vmatpush1.bf16.msra.mxu0 %v2797_v7  ;;  %1833 = vmatpush1.bf16.msra.mxu1 %v2800_v8  ;;  %v2887_v7 = vld [vmem:[#allocation3 + $0x3e0] ss:$16 sps:$4 sm:$0xff]   ;;  %v2890_v8 = vld [vmem:[#allocation3 + $0x3e8] ss:$16 sps:$4 sm:$0xff]  }
  0x55   :  { %1662 = vmatprep.subr.bf16.mxu0 %v2805_v10  ;;  %1834 = vmatprep.subr.bf16.mxu1 %v2808_v11  ;;  %v37_v10 = vld [vmem:[%s3342_s0 + $0x10] sm:$0xff] }
  0x56   :  { %1692 = vmatprep.mubr.bf16.mxu0 %v54_v36  ;;  %1864 = vmatprep.mubr.bf16.mxu1 %v54_v36  ;;  %v45_v11 = vld [vmem:[%s3342_s0 + $0x50] sm:$0xff]  ;;  %v2928_v36 = vld [vmem:[#allocation3 + $0x4ac] ss:$16 sps:$4 sm:$0xff]  }
  0x58   :  { %1663 = vmatpush1.bf16.msra.mxu0 %v2803_v12  ;;  %1835 = vmatpush1.bf16.msra.mxu1 %v2806_v13  ;;  %v2898_v12 = vld [vmem:[#allocation3 + $0x40c] ss:$16 sps:$4 sm:$0xff]   ;;  %v2893_v13 = vld [vmem:[#allocation3 + $0x400] ss:$16 sps:$4 sm:$0xff]  }
  0x59   :  { %1664 = vmatprep.subr.bf16.mxu0 %v2811_v14  ;;  %1836 = vmatprep.subr.bf16.mxu1 %v2814_v15  ;;  %v2896_v14 = vld [vmem:[#allocation3 + $0x408] ss:$16 sps:$4 sm:$0xff]   ;;  %v53_v15 = vpack.c.bf16 %v45_v11, %v37_v10  ;;  %v2985_v11 = vld [vmem:[#allocation3 + $0x5e4] ss:$16 sps:$4 sm:$0xff]  }
  0x5a   :  { %v2980_v10 = vld [vmem:[#allocation3 + $0x5c8] ss:$16 sps:$4 sm:$0xff]  }
  0x5c   :  { %1665 = vmatpush1.bf16.msra.mxu0 %v2809_v16  ;;  %1837 = vmatpush1.bf16.msra.mxu1 %v2812_v17  ;;  %v2901_v16 = vld [vmem:[#allocation3 + $0x424] ss:$16 sps:$4 sm:$0xff]   ;;  %v2904_v17 = vld [vmem:[#allocation3 + $0x42c] ss:$16 sps:$4 sm:$0xff]  }
  0x5d   :  { %1666 = vmatprep.subr.bf16.mxu0 %v2817_v18  ;;  %1838 = vmatprep.subr.bf16.mxu1 %v2820_v19  ;;  %v40_v18 = vld [vmem:[%s3342_s0 + $0x28] sm:$0xff] }
  0x5e   :  { %v48_v19 = vld [vmem:[%s3342_s0 + $0x68] sm:$0xff] }
  0x60   :  { %1667 = vmatpush1.bf16.msra.mxu0 %v2815_v20  ;;  %1839 = vmatpush1.bf16.msra.mxu1 %v2818_v21  ;;  %v2899_v20 = vld [vmem:[#allocation3 + $0x420] ss:$16 sps:$4 sm:$0xff]   ;;  %v2902_v21 = vld [vmem:[#allocation3 + $0x428] ss:$16 sps:$4 sm:$0xff]  }
  0x61   :  { %1668 = vmatprep.subr.bf16.mxu0 %v2823_v22  ;;  %1840 = vmatprep.subr.bf16.mxu1 %v2826_v23  ;;  %v56_v22 = vpack.c.bf16 %v48_v19, %v40_v18  ;;  %v2907_v23 = vld [vmem:[#allocation3 + $0x444] ss:$16 sps:$4 sm:$0xff]   ;;  %v2994_v18 = vld [vmem:[#allocation3 + $0x60c] ss:$16 sps:$4 sm:$0xff]   ;;  %v2989_v19 = vld [vmem:[#allocation3 + $0x600] ss:$16 sps:$4 sm:$0xff]  }
  0x64   :  { %1669 = vmatpush1.bf16.msra.mxu0 %v2821_v24  ;;  %1841 = vmatpush1.bf16.msra.mxu1 %v2824_v25  ;;  %v2910_v24 = vld [vmem:[#allocation3 + $0x44c] ss:$16 sps:$4 sm:$0xff]   ;;  %v2905_v25 = vld [vmem:[#allocation3 + $0x440] ss:$16 sps:$4 sm:$0xff]  }
  0x65   :  { %1670 = vmatprep.subr.bf16.mxu0 %v2829_v26  ;;  %1842 = vmatprep.subr.bf16.mxu1 %v2832_v27  ;;  %v2908_v26 = vld [vmem:[#allocation3 + $0x448] ss:$16 sps:$4 sm:$0xff]   ;;  %v2913_v27 = vld [vmem:[#allocation3 + $0x464] ss:$16 sps:$4 sm:$0xff]  }
  0x68   :  { %1671 = vmatpush1.bf16.msra.mxu0 %v2827_v28  ;;  %1843 = vmatpush1.bf16.msra.mxu1 %v2830_v29  ;;  %v2916_v28 = vld [vmem:[#allocation3 + $0x46c] ss:$16 sps:$4 sm:$0xff]   ;;  %v2911_v29 = vld [vmem:[#allocation3 + $0x460] ss:$16 sps:$4 sm:$0xff]  }
  0x69   :  { %1672 = vmatprep.subr.bf16.mxu0 %v2835_v30  ;;  %1844 = vmatprep.subr.bf16.mxu1 %v2838_v31  ;;  %v2914_v30 = vld [vmem:[#allocation3 + $0x468] ss:$16 sps:$4 sm:$0xff]   ;;  %v2919_v31 = vld [vmem:[#allocation3 + $0x484] ss:$16 sps:$4 sm:$0xff]  }
  0x6c   :  { %1673 = vmatpush1.bf16.msra.mxu0 %v2833_v34  ;;  %1845 = vmatpush1.bf16.msra.mxu1 %v2836_v35  ;;  %v2920_v34 = vld [vmem:[#allocation3 + $0x488] ss:$16 sps:$4 sm:$0xff]   ;;  %v2925_v35 = vld [vmem:[#allocation3 + $0x4a4] ss:$16 sps:$4 sm:$0xff]  }
  0x6d   :  { %1674 = vmatprep.subr.bf16.mxu0 %v2841_v37  ;;  %1846 = vmatprep.subr.bf16.mxu1 %v2844_v38  ;;  %v2923_v37 = vld [vmem:[#allocation3 + $0x4a0] ss:$16 sps:$4 sm:$0xff]   ;;  %v2926_v38 = vld [vmem:[#allocation3 + $0x4a8] ss:$16 sps:$4 sm:$0xff]  }
  0x70   :  { %1675 = vmatpush1.bf16.msra.mxu0 %v2839_v39  ;;  %1847 = vmatpush1.bf16.msra.mxu1 %v2842_v40  ;;  %v2931_v39 = vld [vmem:[#allocation3 + $0x4c4] ss:$16 sps:$4 sm:$0xff]   ;;  %v2934_v40 = vld [vmem:[#allocation3 + $0x4cc] ss:$16 sps:$4 sm:$0xff]  }
  0x71   :  { %1676 = vmatprep.subr.bf16.mxu0 %v2847_v41  ;;  %1848 = vmatprep.subr.bf16.mxu1 %v2850_v42  ;;  %v2929_v41 = vld [vmem:[#allocation3 + $0x4c0] ss:$16 sps:$4 sm:$0xff]   ;;  %v2932_v42 = vld [vmem:[#allocation3 + $0x4c8] ss:$16 sps:$4 sm:$0xff]  }
  0x74   :  { %1677 = vmatpush1.bf16.msra.mxu0 %v2845_v43  ;;  %1849 = vmatpush1.bf16.msra.mxu1 %v2848_v44  ;;  %v2937_v43 = vld [vmem:[#allocation3 + $0x4e4] ss:$16 sps:$4 sm:$0xff]   ;;  %v2940_v44 = vld [vmem:[#allocation3 + $0x4ec] ss:$16 sps:$4 sm:$0xff]  }
  0x75   :  { %1678 = vmatprep.subr.bf16.mxu0 %v2853_v45  ;;  %1850 = vmatprep.subr.bf16.mxu1 %v2856_v46  ;;  %v2935_v45 = vld [vmem:[#allocation3 + $0x4e0] ss:$16 sps:$4 sm:$0xff]   ;;  %v2938_v46 = vld [vmem:[#allocation3 + $0x4e8] ss:$16 sps:$4 sm:$0xff]  }
  0x78   :  { %1679 = vmatpush1.bf16.msra.mxu0 %v2851_v47  ;;  %1851 = vmatpush1.bf16.msra.mxu1 %v2854_v48  ;;  %v2943_v47 = vld [vmem:[#allocation3 + $0x504] ss:$16 sps:$4 sm:$0xff]   ;;  %v2946_v48 = vld [vmem:[#allocation3 + $0x50c] ss:$16 sps:$4 sm:$0xff]  }
  0x79   :  { %1680 = vmatprep.subr.bf16.mxu0 %v2859_v49  ;;  %1852 = vmatprep.subr.bf16.mxu1 %v2862_v50  ;;  %v2941_v49 = vld [vmem:[#allocation3 + $0x500] ss:$16 sps:$4 sm:$0xff]   ;;  %v2944_v50 = vld [vmem:[#allocation3 + $0x508] ss:$16 sps:$4 sm:$0xff]  }
  0x7c   :  { %1681 = vmatpush1.bf16.msra.mxu0 %v2857_v51  ;;  %1853 = vmatpush1.bf16.msra.mxu1 %v2860_v52  ;;  %v2949_v51 = vld [vmem:[#allocation3 + $0x524] ss:$16 sps:$4 sm:$0xff]   ;;  %v2952_v52 = vld [vmem:[#allocation3 + $0x52c] ss:$16 sps:$4 sm:$0xff]  }
  0x7d   :  { %1682 = vmatprep.subr.bf16.mxu0 %v2865_v53  ;;  %1854 = vmatprep.subr.bf16.mxu1 %v2868_v54  ;;  %v2947_v53 = vld [vmem:[#allocation3 + $0x520] ss:$16 sps:$4 sm:$0xff]   ;;  %v2950_v54 = vld [vmem:[#allocation3 + $0x528] ss:$16 sps:$4 sm:$0xff]  }
  0x80   :  { %1683 = vmatpush1.bf16.msra.mxu0 %v2863_v55  ;;  %1855 = vmatpush1.bf16.msra.mxu1 %v2866_v56  ;;  %v2955_v55 = vld [vmem:[#allocation3 + $0x544] ss:$16 sps:$4 sm:$0xff]   ;;  %v2958_v56 = vld [vmem:[#allocation3 + $0x54c] ss:$16 sps:$4 sm:$0xff]  }
  0x81   :  { %1684 = vmatprep.subr.bf16.mxu0 %v2871_v57  ;;  %1856 = vmatprep.subr.bf16.mxu1 %v2874_v58  ;;  %v2953_v57 = vld [vmem:[#allocation3 + $0x540] ss:$16 sps:$4 sm:$0xff]   ;;  %v2956_v58 = vld [vmem:[#allocation3 + $0x548] ss:$16 sps:$4 sm:$0xff]  }
  0x84   :  { %1685 = vmatpush1.bf16.msra.mxu0 %v2869_v59  ;;  %1857 = vmatpush1.bf16.msra.mxu1 %v2872_v60  ;;  %v2961_v59 = vld [vmem:[#allocation3 + $0x564] ss:$16 sps:$4 sm:$0xff]   ;;  %v2964_v60 = vld [vmem:[#allocation3 + $0x56c] ss:$16 sps:$4 sm:$0xff]  }
  0x85   :  { %1686 = vmatprep.subr.bf16.mxu0 %v2877_v61  ;;  %1858 = vmatprep.subr.bf16.mxu1 %v2880_v62  ;;  %v2959_v61 = vld [vmem:[#allocation3 + $0x560] ss:$16 sps:$4 sm:$0xff]   ;;  %v2962_v62 = vld [vmem:[#allocation3 + $0x568] ss:$16 sps:$4 sm:$0xff]  }
  0x88   :  { %1687 = vmatpush1.bf16.msra.mxu0 %v2875_v63  ;;  %1859 = vmatpush1.bf16.msra.mxu1 %v2878_v0  ;;  %v2967_v63 = vld [vmem:[#allocation3 + $0x584] ss:$16 sps:$4 sm:$0xff]   ;;  %v2970_v0 = vld [vmem:[#allocation3 + $0x58c] ss:$16 sps:$4 sm:$0xff]  }
  0x89   :  { %1688 = vmatprep.subr.bf16.mxu0 %v2883_v1  ;;  %1860 = vmatprep.subr.bf16.mxu1 %v2886_v2  ;;  %v2965_v1 = vld [vmem:[#allocation3 + $0x580] ss:$16 sps:$4 sm:$0xff]   ;;  %v2968_v2 = vld [vmem:[#allocation3 + $0x588] ss:$16 sps:$4 sm:$0xff]  }
  0x8c   :  { %1689 = vmatpush1.bf16.msra.mxu0 %v2881_v3  ;;  %1861 = vmatpush1.bf16.msra.mxu1 %v2884_v4  ;;  %v2973_v3 = vld [vmem:[#allocation3 + $0x5a4] ss:$16 sps:$4 sm:$0xff]   ;;  %v2976_v4 = vld [vmem:[#allocation3 + $0x5ac] ss:$16 sps:$4 sm:$0xff]  }
  0x8d   :  { %1690 = vmatprep.subr.bf16.mxu0 %v2889_v5  ;;  %1862 = vmatprep.subr.bf16.mxu1 %v2892_v6  ;;  %v2971_v5 = vld [vmem:[#allocation3 + $0x5a0] ss:$16 sps:$4 sm:$0xff]   ;;  %v2974_v6 = vld [vmem:[#allocation3 + $0x5a8] ss:$16 sps:$4 sm:$0xff]  }
  0x90   :  { %1691 = vmatpush1.bf16.msra.mxu0 %v2887_v7  ;;  %1863 = vmatpush1.bf16.msra.mxu1 %v2890_v8  ;;  %v2979_v7 = vld [vmem:[#allocation3 + $0x5c4] ss:$16 sps:$4 sm:$0xff]   ;;  %v2982_v8 = vld [vmem:[#allocation3 + $0x5cc] ss:$16 sps:$4 sm:$0xff]  }
  0x91   :  { %1703 = vmatprep.subr.bf16.mxu0 %v2895_v9  ;;  %1875 = vmatprep.subr.bf16.mxu1 %v2898_v12  ;;  %v2977_v9 = vld [vmem:[#allocation3 + $0x5c0] ss:$16 sps:$4 sm:$0xff]   ;;  %v2988_v12 = vld [vmem:[#allocation3 + $0x5ec] ss:$16 sps:$4 sm:$0xff]  }
  0x93   :  { %1693 = vmatmul.mubr.bf16.vlgmr.msra.gmra.mrb[0].mxu0 %v53_v15  ;;  %1865 = vmatmul.mubr.bf16.vlgmr.msra.gmra.mrb[0].mxu1 %v53_v15  ;;  %v2991_v15 = vld [vmem:[#allocation3 + $0x604] ss:$16 sps:$4 sm:$0xff]  }
  0x94   :  { %1704 = vmatpush1.bf16.msra.mxu0 %v2893_v13  ;;  %1876 = vmatpush1.bf16.msra.mxu1 %v2896_v14  ;;  %v2983_v13 = vld [vmem:[#allocation3 + $0x5e0] ss:$16 sps:$4 sm:$0xff]   ;;  %v2986_v14 = vld [vmem:[#allocation3 + $0x5e8] ss:$16 sps:$4 sm:$0xff]  }
  0x95   :  { %1705 = vmatprep.subr.bf16.mxu0 %v2901_v16  ;;  %1877 = vmatprep.subr.bf16.mxu1 %v2904_v17  ;;  %v39_v16 = vld [vmem:[%s3342_s0 + $0x20] sm:$0xff] }
  0x96   :  { %1735 = vmatprep.mubr.bf16.mxu0 %v56_v22  ;;  %1907 = vmatprep.mubr.bf16.mxu1 %v56_v22  ;;  %v47_v17 = vld [vmem:[%s3342_s0 + $0x60] sm:$0xff] }
  0x97   :  { %v55_v22 = vpack.c.bf16 %v47_v17, %v39_v16  ;;  %v3076_v16 = vld [vmem:[#allocation3 + $0x7c8] ss:$16 sps:$4 sm:$0xff]   ;;  %v3081_v17 = vld [vmem:[#allocation3 + $0x7e4] ss:$16 sps:$4 sm:$0xff]  }
  0x98   :  { %1706 = vmatpush1.bf16.msra.mxu0 %v2899_v20  ;;  %1878 = vmatpush1.bf16.msra.mxu1 %v2902_v21  ;;  %v2992_v20 = vld [vmem:[#allocation3 + $0x608] ss:$16 sps:$4 sm:$0xff]  }
  0x99   :  { %1707 = vmatprep.subr.bf16.mxu0 %v2907_v23  ;;  %1879 = vmatprep.subr.bf16.mxu1 %v2910_v24  ;;  %v42_v21 = vld [vmem:[%s3342_s0 + $0x38] sm:$0xff]  ;;  %v2997_v24 = vld [vmem:[#allocation3 + $0x624] ss:$16 sps:$4 sm:$0xff]  }
  0x9a   :  { %v50_v23 = vld [vmem:[%s3342_s0 + $0x78] sm:$0xff] }
  0x9c   :  { %1708 = vmatpush1.bf16.msra.mxu0 %v2905_v25  ;;  %1880 = vmatpush1.bf16.msra.mxu1 %v2908_v26  ;;  %v3000_v25 = vld [vmem:[#allocation3 + $0x62c] ss:$16 sps:$4 sm:$0xff]   ;;  %v2995_v26 = vld [vmem:[#allocation3 + $0x620] ss:$16 sps:$4 sm:$0xff]  }
  0x9d   :  { %1709 = vmatprep.subr.bf16.mxu0 %v2913_v27  ;;  %1881 = vmatprep.subr.bf16.mxu1 %v2916_v28  ;;  %v58_v27 = vpack.c.bf16 %v50_v23, %v42_v21  ;;  %v2998_v28 = vld [vmem:[#allocation3 + $0x628] ss:$16 sps:$4 sm:$0xff]   ;;  %v41_v21 = vld [vmem:[%s3342_s0 + $0x30] sm:$0xff]  ;;  %v3085_v23 = vld [vmem:[%s3345_s3 + $0x40] sm:$0xff]  }
  0xa0   :  { %1710 = vmatpush1.bf16.msra.mxu0 %v2911_v29  ;;  %1882 = vmatpush1.bf16.msra.mxu1 %v2914_v30  ;;  %v3003_v29 = vld [vmem:[#allocation3 + $0x644] ss:$16 sps:$4 sm:$0xff]   ;;  %v3006_v30 = vld [vmem:[#allocation3 + $0x64c] ss:$16 sps:$4 sm:$0xff]  }
  0xa1   :  { %1711 = vmatprep.subr.bf16.mxu0 %v2919_v31  ;;  %1883 = vmatprep.subr.bf16.mxu1 %v2922_v32  ;;  %v3001_v31 = vld [vmem:[#allocation3 + $0x640] ss:$16 sps:$4 sm:$0xff]   ;;  %v3004_v32 = vld [vmem:[#allocation3 + $0x648] ss:$16 sps:$4 sm:$0xff]  }
  0xa4   :  { %1712 = vmatpush1.bf16.msra.mxu0 %v2917_v33  ;;  %1884 = vmatpush1.bf16.msra.mxu1 %v2920_v34  ;;  %v3009_v33 = vld [vmem:[#allocation3 + $0x664] ss:$16 sps:$4 sm:$0xff]   ;;  %v3012_v34 = vld [vmem:[#allocation3 + $0x66c] ss:$16 sps:$4 sm:$0xff]  }
  0xa5   :  { %1713 = vmatprep.subr.bf16.mxu0 %v2925_v35  ;;  %1885 = vmatprep.subr.bf16.mxu1 %v2928_v36  ;;  %v3007_v35 = vld [vmem:[#allocation3 + $0x660] ss:$16 sps:$4 sm:$0xff]   ;;  %v3010_v36 = vld [vmem:[#allocation3 + $0x668] ss:$16 sps:$4 sm:$0xff]  }
  0xa8   :  { %1714 = vmatpush1.bf16.msra.mxu0 %v2923_v37  ;;  %1886 = vmatpush1.bf16.msra.mxu1 %v2926_v38  ;;  %v3015_v37 = vld [vmem:[#allocation3 + $0x684] ss:$16 sps:$4 sm:$0xff]   ;;  %v3018_v38 = vld [vmem:[#allocation3 + $0x68c] ss:$16 sps:$4 sm:$0xff]  }
  0xa9   :  { %1715 = vmatprep.subr.bf16.mxu0 %v2931_v39  ;;  %1887 = vmatprep.subr.bf16.mxu1 %v2934_v40  ;;  %v3013_v39 = vld [vmem:[#allocation3 + $0x680] ss:$16 sps:$4 sm:$0xff]   ;;  %v3016_v40 = vld [vmem:[#allocation3 + $0x688] ss:$16 sps:$4 sm:$0xff]  }
  0xac   :  { %1716 = vmatpush1.bf16.msra.mxu0 %v2929_v41  ;;  %1888 = vmatpush1.bf16.msra.mxu1 %v2932_v42  ;;  %v3021_v41 = vld [vmem:[#allocation3 + $0x6a4] ss:$16 sps:$4 sm:$0xff]   ;;  %v3024_v42 = vld [vmem:[#allocation3 + $0x6ac] ss:$16 sps:$4 sm:$0xff]  }
  0xad   :  { %1717 = vmatprep.subr.bf16.mxu0 %v2937_v43  ;;  %1889 = vmatprep.subr.bf16.mxu1 %v2940_v44  ;;  %v3019_v43 = vld [vmem:[#allocation3 + $0x6a0] ss:$16 sps:$4 sm:$0xff]   ;;  %v3022_v44 = vld [vmem:[#allocation3 + $0x6a8] ss:$16 sps:$4 sm:$0xff]  }
  0xb0   :  { %1718 = vmatpush1.bf16.msra.mxu0 %v2935_v45  ;;  %1890 = vmatpush1.bf16.msra.mxu1 %v2938_v46  ;;  %v3027_v45 = vld [vmem:[#allocation3 + $0x6c4] ss:$16 sps:$4 sm:$0xff]   ;;  %v3030_v46 = vld [vmem:[#allocation3 + $0x6cc] ss:$16 sps:$4 sm:$0xff]  }
  0xb1   :  { %1719 = vmatprep.subr.bf16.mxu0 %v2943_v47  ;;  %1891 = vmatprep.subr.bf16.mxu1 %v2946_v48  ;;  %v3025_v47 = vld [vmem:[#allocation3 + $0x6c0] ss:$16 sps:$4 sm:$0xff]   ;;  %v3028_v48 = vld [vmem:[#allocation3 + $0x6c8] ss:$16 sps:$4 sm:$0xff]  }
  0xb4   :  { %1720 = vmatpush1.bf16.msra.mxu0 %v2941_v49  ;;  %1892 = vmatpush1.bf16.msra.mxu1 %v2944_v50  ;;  %v3033_v49 = vld [vmem:[#allocation3 + $0x6e4] ss:$16 sps:$4 sm:$0xff]   ;;  %v3036_v50 = vld [vmem:[#allocation3 + $0x6ec] ss:$16 sps:$4 sm:$0xff]  }
  0xb5   :  { %1721 = vmatprep.subr.bf16.mxu0 %v2949_v51  ;;  %1893 = vmatprep.subr.bf16.mxu1 %v2952_v52  ;;  %v3031_v51 = vld [vmem:[#allocation3 + $0x6e0] ss:$16 sps:$4 sm:$0xff]   ;;  %v3034_v52 = vld [vmem:[#allocation3 + $0x6e8] ss:$16 sps:$4 sm:$0xff]  }
  0xb8   :  { %1722 = vmatpush1.bf16.msra.mxu0 %v2947_v53  ;;  %1894 = vmatpush1.bf16.msra.mxu1 %v2950_v54  ;;  %v3039_v53 = vld [vmem:[#allocation3 + $0x704] ss:$16 sps:$4 sm:$0xff]   ;;  %v3042_v54 = vld [vmem:[#allocation3 + $0x70c] ss:$16 sps:$4 sm:$0xff]  }
  0xb9   :  { %1723 = vmatprep.subr.bf16.mxu0 %v2955_v55  ;;  %1895 = vmatprep.subr.bf16.mxu1 %v2958_v56  ;;  %v3037_v55 = vld [vmem:[#allocation3 + $0x700] ss:$16 sps:$4 sm:$0xff]   ;;  %v3040_v56 = vld [vmem:[#allocation3 + $0x708] ss:$16 sps:$4 sm:$0xff]  }
  0xbc   :  { %1724 = vmatpush1.bf16.msra.mxu0 %v2953_v57  ;;  %1896 = vmatpush1.bf16.msra.mxu1 %v2956_v58  ;;  %v3045_v57 = vld [vmem:[#allocation3 + $0x724] ss:$16 sps:$4 sm:$0xff]   ;;  %v3048_v58 = vld [vmem:[#allocation3 + $0x72c] ss:$16 sps:$4 sm:$0xff]  }
  0xbd   :  { %1725 = vmatprep.subr.bf16.mxu0 %v2961_v59  ;;  %1897 = vmatprep.subr.bf16.mxu1 %v2964_v60  ;;  %v3043_v59 = vld [vmem:[#allocation3 + $0x720] ss:$16 sps:$4 sm:$0xff]   ;;  %v3046_v60 = vld [vmem:[#allocation3 + $0x728] ss:$16 sps:$4 sm:$0xff]  }
  0xc0   :  { %1726 = vmatpush1.bf16.msra.mxu0 %v2959_v61  ;;  %1898 = vmatpush1.bf16.msra.mxu1 %v2962_v62  ;;  %v3051_v61 = vld [vmem:[#allocation3 + $0x744] ss:$16 sps:$4 sm:$0xff]   ;;  %v3054_v62 = vld [vmem:[#allocation3 + $0x74c] ss:$16 sps:$4 sm:$0xff]  }
  0xc1   :  { %1727 = vmatprep.subr.bf16.mxu0 %v2967_v63  ;;  %1899 = vmatprep.subr.bf16.mxu1 %v2970_v0  ;;  %v3049_v63 = vld [vmem:[#allocation3 + $0x740] ss:$16 sps:$4 sm:$0xff]   ;;  %v3052_v0 = vld [vmem:[#allocation3 + $0x748] ss:$16 sps:$4 sm:$0xff]  }
  0xc4   :  { %1728 = vmatpush1.bf16.msra.mxu0 %v2965_v1  ;;  %1900 = vmatpush1.bf16.msra.mxu1 %v2968_v2  ;;  %v3057_v1 = vld [vmem:[#allocation3 + $0x764] ss:$16 sps:$4 sm:$0xff]   ;;  %v3060_v2 = vld [vmem:[#allocation3 + $0x76c] ss:$16 sps:$4 sm:$0xff]  }
  0xc5   :  { %1729 = vmatprep.subr.bf16.mxu0 %v2973_v3  ;;  %1901 = vmatprep.subr.bf16.mxu1 %v2976_v4  ;;  %v3055_v3 = vld [vmem:[#allocation3 + $0x760] ss:$16 sps:$4 sm:$0xff]   ;;  %v3058_v4 = vld [vmem:[#allocation3 + $0x768] ss:$16 sps:$4 sm:$0xff]  }
  0xc8   :  { %1730 = vmatpush1.bf16.msra.mxu0 %v2971_v5  ;;  %1902 = vmatpush1.bf16.msra.mxu1 %v2974_v6  ;;  %v3063_v5 = vld [vmem:[#allocation3 + $0x784] ss:$16 sps:$4 sm:$0xff]   ;;  %v3066_v6 = vld [vmem:[#allocation3 + $0x78c] ss:$16 sps:$4 sm:$0xff]  }
  0xc9   :  { %1731 = vmatprep.subr.bf16.mxu0 %v2979_v7  ;;  %1903 = vmatprep.subr.bf16.mxu1 %v2982_v8  ;;  %v3061_v7 = vld [vmem:[#allocation3 + $0x780] ss:$16 sps:$4 sm:$0xff]   ;;  %v3064_v8 = vld [vmem:[#allocation3 + $0x788] ss:$16 sps:$4 sm:$0xff]  }
  0xcc   :  { %1732 = vmatpush1.bf16.msra.mxu0 %v2977_v9  ;;  %1904 = vmatpush1.bf16.msra.mxu1 %v2980_v10  ;;  %v3069_v9 = vld [vmem:[#allocation3 + $0x7a4] ss:$16 sps:$4 sm:$0xff]   ;;  %v3072_v10 = vld [vmem:[#allocation3 + $0x7ac] ss:$16 sps:$4 sm:$0xff]  }
  0xcd   :  { %1733 = vmatprep.subr.bf16.mxu0 %v2985_v11  ;;  %1905 = vmatprep.subr.bf16.mxu1 %v2988_v12  ;;  %v3067_v11 = vld [vmem:[#allocation3 + $0x7a0] ss:$16 sps:$4 sm:$0xff]   ;;  %v3070_v12 = vld [vmem:[#allocation3 + $0x7a8] ss:$16 sps:$4 sm:$0xff]  }
  0xd0   :  { %1734 = vmatpush1.bf16.msra.mxu0 %v2983_v13  ;;  %1906 = vmatpush1.bf16.msra.mxu1 %v2986_v14  ;;  %v3075_v13 = vld [vmem:[#allocation3 + $0x7c4] ss:$16 sps:$4 sm:$0xff]   ;;  %v3078_v14 = vld [vmem:[#allocation3 + $0x7cc] ss:$16 sps:$4 sm:$0xff]  }
  0xd1   :  { %1746 = vmatprep.subr.bf16.mxu0 %v2991_v15  ;;  %1918 = vmatprep.subr.bf16.mxu1 %v2994_v18  ;;  %v3073_v15 = vld [vmem:[#allocation3 + $0x7c0] ss:$16 sps:$4 sm:$0xff]   ;;  %v3084_v18 = vld [vmem:[#allocation3 + $0x7ec] ss:$16 sps:$4 sm:$0xff]  }
  0xd3   :  { %1736 = vmatmul.mubr.bf16.vlgmr.msra.gmra.mrb[0].mxu0 %v55_v22  ;;  %1908 = vmatmul.mubr.bf16.vlgmr.msra.gmra.mrb[0].mxu1 %v55_v22  ;;  %v49_v22 = vld [vmem:[%s3342_s0 + $0x70] sm:$0xff] }
  0xd4   :  { %1747 = vmatpush1.bf16.msra.mxu0 %v2989_v19  ;;  %1919 = vmatpush1.bf16.msra.mxu1 %v2992_v20  ;;  %v3079_v19 = vld [vmem:[#allocation3 + $0x7e0] ss:$16 sps:$4 sm:$0xff]   ;;  %v3082_v20 = vld [vmem:[#allocation3 + $0x7e8] ss:$16 sps:$4 sm:$0xff]  }
  0xd5   :  { %1748 = vmatprep.subr.bf16.mxu0 %v2997_v24  ;;  %1920 = vmatprep.subr.bf16.mxu1 %v3000_v25  ;;  %v3086_v24 = vld [vmem:[%s3345_s3 + $0xc0] sm:$0xff]   ;;  %v57_v25 = vpack.c.bf16 %v49_v22, %v41_v21 }
  0xd6   :  { %1778 = vmatprep.mubr.bf16.mxu0 %v58_v27  ;;  %1950 = vmatprep.mubr.bf16.mxu1 %v58_v27  ;;  %v3088_v27 = vld [vmem:[%s3345_s3 + $0x80] sm:$0xff]  }
  0xd8   :  { %1749 = vmatpush1.bf16.msra.mxu0 %v2995_v26  ;;  %1921 = vmatpush1.bf16.msra.mxu1 %v2998_v28  ;;  %v3087_v26 = vld [vmem:[%s3345_s3] sm:$0xff]   ;;  %v3089_v28 = vld [vmem:[%s3345_s3 + $0x48] sm:$0xff]  }
  0xd9   :  { %1750 = vmatprep.subr.bf16.mxu0 %v3003_v29  ;;  %1922 = vmatprep.subr.bf16.mxu1 %v3006_v30  ;;  %v3090_v29 = vld [vmem:[%s3345_s3 + $0xc8] sm:$0xff]  }
  0xda   :  { %v3091_v30 = vld [vmem:[%s3345_s3 + $0x8] sm:$0xff]  }
  0xdc   :  { %1751 = vmatpush1.bf16.msra.mxu0 %v3001_v31  ;;  %1923 = vmatpush1.bf16.msra.mxu1 %v3004_v32  ;;  %v3092_v31 = vld [vmem:[%s3345_s3 + $0x88] sm:$0xff]   ;;  %v3093_v32 = vld [vmem:[%s3345_s3 + $0x50] sm:$0xff]  }
  0xdd   :  { %1752 = vmatprep.subr.bf16.mxu0 %v3009_v33  ;;  %1924 = vmatprep.subr.bf16.mxu1 %v3012_v34  ;;  %v3094_v33 = vld [vmem:[%s3345_s3 + $0xd0] sm:$0xff]  }
  0xde   :  { %v3095_v34 = vld [vmem:[%s3345_s3 + $0x10] sm:$0xff]  }
  0xe0   :  { %1753 = vmatpush1.bf16.msra.mxu0 %v3007_v35  ;;  %1925 = vmatpush1.bf16.msra.mxu1 %v3010_v36  ;;  %v3096_v35 = vld [vmem:[%s3345_s3 + $0x90] sm:$0xff]   ;;  %v3097_v36 = vld [vmem:[%s3345_s3 + $0x58] sm:$0xff]  }
  0xe1   :  { %1754 = vmatprep.subr.bf16.mxu0 %v3015_v37  ;;  %1926 = vmatprep.subr.bf16.mxu1 %v3018_v38  ;;  %v3098_v37 = vld [vmem:[%s3345_s3 + $0xd8] sm:$0xff]  }
  0xe2   :  { %v3099_v38 = vld [vmem:[%s3345_s3 + $0x18] sm:$0xff]  }
  0xe4   :  { %1755 = vmatpush1.bf16.msra.mxu0 %v3013_v39  ;;  %1927 = vmatpush1.bf16.msra.mxu1 %v3016_v40  ;;  %v3100_v39 = vld [vmem:[%s3345_s3 + $0x98] sm:$0xff]   ;;  %v3101_v40 = vld [vmem:[%s3345_s3 + $0x60] sm:$0xff]  }
  0xe5   :  { %1756 = vmatprep.subr.bf16.mxu0 %v3021_v41  ;;  %1928 = vmatprep.subr.bf16.mxu1 %v3024_v42  ;;  %v3102_v41 = vld [vmem:[%s3345_s3 + $0xe0] sm:$0xff]  }
  0xe6   :  { %v3103_v42 = vld [vmem:[%s3345_s3 + $0x20] sm:$0xff]  }
  0xe8   :  { %1757 = vmatpush1.bf16.msra.mxu0 %v3019_v43  ;;  %1929 = vmatpush1.bf16.msra.mxu1 %v3022_v44  ;;  %v3104_v43 = vld [vmem:[%s3345_s3 + $0xa0] sm:$0xff]   ;;  %v3105_v44 = vld [vmem:[%s3345_s3 + $0x68] sm:$0xff]  }
  0xe9   :  { %1758 = vmatprep.subr.bf16.mxu0 %v3027_v45  ;;  %1930 = vmatprep.subr.bf16.mxu1 %v3030_v46  ;;  %v3106_v45 = vld [vmem:[%s3345_s3 + $0xe8] sm:$0xff]  }
  0xea   :  { %v3107_v46 = vld [vmem:[%s3345_s3 + $0x28] sm:$0xff]  }
  0xec   :  { %1759 = vmatpush1.bf16.msra.mxu0 %v3025_v47  ;;  %1931 = vmatpush1.bf16.msra.mxu1 %v3028_v48  ;;  %v3108_v47 = vld [vmem:[%s3345_s3 + $0xa8] sm:$0xff]   ;;  %v3109_v48 = vld [vmem:[%s3345_s3 + $0x70] sm:$0xff]  }
  0xed   :  { %1760 = vmatprep.subr.bf16.mxu0 %v3033_v49  ;;  %1932 = vmatprep.subr.bf16.mxu1 %v3036_v50  ;;  %v3110_v49 = vld [vmem:[%s3345_s3 + $0xf0] sm:$0xff]  }
  0xee   :  { %v3111_v50 = vld [vmem:[%s3345_s3 + $0x30] sm:$0xff]  }
  0xf0   :  { %1761 = vmatpush1.bf16.msra.mxu0 %v3031_v51  ;;  %1933 = vmatpush1.bf16.msra.mxu1 %v3034_v52  ;;  %v3112_v51 = vld [vmem:[%s3345_s3 + $0xb0] sm:$0xff]   ;;  %v3113_v52 = vld [vmem:[%s3345_s3 + $0x78] sm:$0xff]  }
  0xf1   :  { %1762 = vmatprep.subr.bf16.mxu0 %v3039_v53  ;;  %1934 = vmatprep.subr.bf16.mxu1 %v3042_v54  ;;  %v3114_v53 = vld [vmem:[%s3345_s3 + $0xf8] sm:$0xff]  }
  0xf2   :  { %v3115_v54 = vld [vmem:[%s3345_s3 + $0x38] sm:$0xff]  }
  0xf4   :  { %1763 = vmatpush1.bf16.msra.mxu0 %v3037_v55  ;;  %1935 = vmatpush1.bf16.msra.mxu1 %v3040_v56  ;;  %v3116_v55 = vld [vmem:[%s3345_s3 + $0xb8] sm:$0xff]   ;;  %v317_v56 = vlaneseq }
  0xf5   :  { %1764 = vmatprep.subr.bf16.mxu0 %v3045_v57  ;;  %1936 = vmatprep.subr.bf16.mxu1 %v3048_v58 }
  0xf6   :  { %v318_v57 = vshrl.u32 %v317_v56, 7 }
  0xf8   :  { %1765 = vmatpush1.bf16.msra.mxu0 %v3043_v59  ;;  %1937 = vmatpush1.bf16.msra.mxu1 %v3046_v60  ;;  %v319_v58 = vsub.s32 0, %v318_v57  ;;  %v327_v59 = vsub.s32 2, %v318_v57  ;;  %v315_v60 = vld [vmem:[%s3344_s2] sm:$0xf] }
  0xf9   :  { %1766 = vmatprep.subr.bf16.mxu0 %v3051_v61  ;;  %1938 = vmatprep.subr.bf16.mxu1 %v3054_v62  ;;  %v323_v61 = vsub.s32 1, %v318_v57  ;;  %v331_v62 = vsub.s32 3, %v318_v57 }
  0xfc   :  { %1767 = vmatpush1.bf16.msra.mxu0 %v3049_v63  ;;  %1939 = vmatpush1.bf16.msra.mxu1 %v3052_v0  ;;  %v320_v63 = vrot.slane %v315_v60, %v319_v58  ;;  %v328_v0 = vrot.slane %v315_v60, %v327_v59 }
  0xfd   :  { %1768 = vmatprep.subr.bf16.mxu0 %v3057_v1  ;;  %1940 = vmatprep.subr.bf16.mxu1 %v3060_v2  ;;  %v324_v1 = vrot.slane %v315_v60, %v323_v61  ;;  %v332_v2 = vrot.slane %v315_v60, %v331_v62 }
 0x100   :  { %1769 = vmatpush1.bf16.msra.mxu0 %v3055_v3  ;;  %1941 = vmatpush1.bf16.msra.mxu1 %v3058_v4 }
 0x101   :  { %1770 = vmatprep.subr.bf16.mxu0 %v3063_v5  ;;  %1942 = vmatprep.subr.bf16.mxu1 %v3066_v6 }
 0x104   :  { %1771 = vmatpush1.bf16.msra.mxu0 %v3061_v7  ;;  %1943 = vmatpush1.bf16.msra.mxu1 %v3064_v8 }
 0x105   :  { %1772 = vmatprep.subr.bf16.mxu0 %v3069_v9  ;;  %1944 = vmatprep.subr.bf16.mxu1 %v3072_v10 }
 0x108   :  { %1773 = vmatpush1.bf16.msra.mxu0 %v3067_v11  ;;  %1945 = vmatpush1.bf16.msra.mxu1 %v3070_v12 }
 0x109   :  { %1774 = vmatprep.subr.bf16.mxu0 %v3075_v13  ;;  %1946 = vmatprep.subr.bf16.mxu1 %v3078_v14 }
 0x10c   :  { %1775 = vmatpush1.bf16.msra.mxu0 %v3073_v15  ;;  %1947 = vmatpush1.bf16.msra.mxu1 %v3076_v16 }
 0x10d   :  { %1776 = vmatprep.subr.bf16.mxu0 %v3081_v17  ;;  %1948 = vmatprep.subr.bf16.mxu1 %v3084_v18 }
 0x110   :  { %1777 = vmatpush1.bf16.msra.mxu0 %v3079_v19  ;;  %1949 = vmatpush1.bf16.msra.mxu1 %v3082_v20 }
 0x111   :  { %2622 = vmatprep.subr.bf16.mxu0 %v3085_v23  ;;  %2644 = vmatprep.subr.bf16.mxu1 %v3086_v24 }
 0x113   :  { %1779 = vmatmul.mubr.bf16.vlgmr.msra.gmra.mrb[0].mxu0 %v57_v25  ;;  %1951 = vmatmul.mubr.bf16.vlgmr.msra.gmra.mrb[0].mxu1 %v57_v25 }
 0x114   :  { %2623 = vmatpush3.bf16.msra.mxu0 %v3087_v26  ;;  %2645 = vmatpush3.bf16.msra.mxu1 %v3088_v27 }
 0x115   :  { %2624 = vmatprep.subr.bf16.mxu0 %v3089_v28  ;;  %2646 = vmatprep.subr.bf16.mxu1 %v3090_v29 }
 0x118   :  { %2625 = vmatpush3.bf16.msra.mxu0 %v3091_v30  ;;  %2647 = vmatpush3.bf16.msra.mxu1 %v3092_v31 }
 0x119   :  { %2626 = vmatprep.subr.bf16.mxu0 %v3093_v32  ;;  %2648 = vmatprep.subr.bf16.mxu1 %v3094_v33  ;;  %v2589_v33 = vld [vmem:[%s3346_s4] ss:$0 sm:$0xff] }
 0x11c   :  { %2627 = vmatpush3.bf16.msra.mxu0 %v3095_v34  ;;  %2649 = vmatpush3.bf16.msra.mxu1 %v3096_v35 }
 0x11d   :  { %2628 = vmatprep.subr.bf16.mxu0 %v3097_v36  ;;  %2650 = vmatprep.subr.bf16.mxu1 %v3098_v37 }
 0x120   :  { %2629 = vmatpush3.bf16.msra.mxu0 %v3099_v38  ;;  %2651 = vmatpush3.bf16.msra.mxu1 %v3100_v39 }
 0x121   :  { %2630 = vmatprep.subr.bf16.mxu0 %v3101_v40  ;;  %2652 = vmatprep.subr.bf16.mxu1 %v3102_v41 }
 0x124   :  { %2631 = vmatpush3.bf16.msra.mxu0 %v3103_v42  ;;  %2653 = vmatpush3.bf16.msra.mxu1 %v3104_v43 }
 0x125   :  { %2632 = vmatprep.subr.bf16.mxu0 %v3105_v44  ;;  %2654 = vmatprep.subr.bf16.mxu1 %v3106_v45 }
 0x128   :  { %2633 = vmatpush3.bf16.msra.mxu0 %v3107_v46  ;;  %2655 = vmatpush3.bf16.msra.mxu1 %v3108_v47 }
 0x129   :  { %2634 = vmatprep.subr.bf16.mxu0 %v3109_v48  ;;  %2656 = vmatprep.subr.bf16.mxu1 %v3110_v49 }
 0x12c   :  { %2635 = vmatpush3.bf16.msra.mxu0 %v3111_v50  ;;  %2657 = vmatpush3.bf16.msra.mxu1 %v3112_v51 }
 0x12d   :  { %2636 = vmatprep.subr.bf16.mxu0 %v3113_v52  ;;  %2658 = vmatprep.subr.bf16.mxu1 %v3114_v53 }
 0x130   :  { %2637 = vmatpush3.bf16.msra.mxu0 %v3115_v54  ;;  %2659 = vmatpush3.bf16.msra.mxu1 %v3116_v55 }
 0x1e6   :  { %v1780_v3 = vpop.f32.mrb[0].mxu0  ;;  %v1952_v4 = vpop.f32.mrb[0].mxu1 }
 0x1e7   :  { %v2666_v5 = vadd.f32 %v1780_v3, %v320_v63  ;;  %v2670_v6 = vadd.f32 %v1952_v4, %v328_v0  ;;  %v1782_v7 = vpop.f32.mrb[1].mxu0  ;;  %v1954_v8 = vpop.f32.mrb[1].mxu1 }
 0x1e8   :  { %v2667_v9 = vadd.f32 %v1782_v7, %v324_v1  ;;  %v2671_v10 = vadd.f32 %v1954_v8, %v332_v2  ;;  %v1784_v11 = vpop.f32.mrb[2].mxu0  ;;  %v1956_v12 = vpop.f32.mrb[2].mxu1 }
 0x1e9   :  { %v2668_v13 = vadd.f32 %v1784_v11, %v320_v63  ;;  %v2672_v14 = vadd.f32 %v1956_v12, %v328_v0  ;;  %v1786_v15 = vpop.f32.mrb[3].mxu0  ;;  %v1958_v16 = vpop.f32.mrb[3].mxu1  ;;  %v1961_v19 = vmax.f32 %v2666_v5, 0.0  ;;  %v1963_v20 = vmax.f32 %v2670_v6, 0.0 }
 0x1ea   :  { %v2669_v17 = vadd.f32 %v1786_v15, %v324_v1  ;;  %v2673_v18 = vadd.f32 %v1958_v16, %v332_v2  ;;  %v1962_v23 = vmax.f32 %v2667_v9, 0.0  ;;  %v1964_v24 = vmax.f32 %v2671_v10, 0.0 }
 0x1eb   :  { %v1965_v21 = vmax.f32 %v2668_v13, 0.0  ;;  %v1967_v22 = vmax.f32 %v2672_v14, 0.0 }
 0x1ec   :  { %v1966_v25 = vmax.f32 %v2669_v17, 0.0  ;;  %v1968_v26 = vmax.f32 %v2673_v18, 0.0 }
 0x1ed   :  { %v1969_v27 = vpack.c.bf16 %v1965_v21, %v1961_v19  ;;  %v1971_v28 = vpack.c.bf16 %v1967_v22, %v1963_v20 }
 0x1ee   :  { %v1970_v29 = vpack.c.bf16 %v1966_v25, %v1962_v23  ;;  %v1972_v30 = vpack.c.bf16 %v1968_v26, %v1964_v24 }
 0x1f0   :  { %2276 = vmatprep.mubr.bf16.mxu0 %v1970_v29  ;;  %2317 = vmatprep.mubr.bf16.mxu1 %v1972_v30 }
 0x1f1   :  { %2277 = vmatmul.mubr.bf16.vlgmr.msra.gmra.mrb[4].mxu0 %v1969_v27  ;;  %2318 = vmatmul.mubr.bf16.vlgmr.msra.gmra.mrb[4].mxu1 %v1971_v28 }
 0x2c4   :  { %v2638_v31 = vpop.f32.mrb[4].mxu0  ;;  %v2660_v32 = vpop.f32.mrb[4].mxu1 }
 0x2c5   :  { %v2639_v34 = vpop.f32.mrb[5].mxu0  ;;  %v2661_v35 = vpop.f32.mrb[5].mxu1 }
 0x2c6   :  { %v2640_v36 = vadd.f32 %v2639_v34, %v2638_v31  ;;  %v2662_v37 = vadd.f32 %v2661_v35, %v2660_v32  ;;  %v2641_v38 = vpop.f32.mrb[6].mxu0  ;;  %v2663_v39 = vpop.f32.mrb[6].mxu1 }
 0x2c7   :  { %v2642_v40 = vpop.f32.mrb[7].mxu0  ;;  %v2664_v41 = vpop.f32.mrb[7].mxu1 }
 0x2c8   :  { %v2279_v42 = vadd.f32 %v2640_v36, %v2589_v33  ;;  %v2643_v43 = vadd.f32 %v2642_v40, %v2641_v38  ;;  %v2665_v44 = vadd.f32 %v2664_v41, %v2663_v39 }
 0x2ca   :  { %v2320_v45 = vadd.f32 %v2662_v37, %v2279_v42  ;;  %v2282_v46 = vadd.f32 %v2643_v43, %v2589_v33 }
 0x2cc   :  { %2326 = vst [vmem:[%s3347_s5] sm:$0xff] %v2320_v45  ;;  %v2323_v47 = vadd.f32 %v2665_v44, %v2282_v46 }
 0x2ce   :  { %2327 = vst [vmem:[%s3347_s5 + $0x8] sm:$0xff] %v2323_v47 }
 0x2cf   :  { %2332 = vsyncpa [#allocation4], 1 }

</bundles_post_ra>
